<compile_context>
chip_gen: v5e
topology: v5e:2x2
jax: 0.10.0
libtpu: 0.0.40
codegen_flags: <defaults>
</compile_context>

<pallas_src>
import functools

import jax
import jax.numpy as jnp
from jax.experimental import pallas as pl
from jax.experimental.pallas import tpu as pltpu

EPS = 1e-5


def _trojan_net_kernel(x_ref, w_ref, v_ref, out_ref, acc_ref, aff_ref, *,
                       batch, num_classes, c_pad, b_tile):
    """Grid = (pass, batch_tile); both axes sequential (training-mode BN).

    x_ref:   (b_tile, 16)       batch-major input tile (rows past `batch` are 0)
    w_ref:   (24 + c_pad, 16)   [W1^T(8,16); W2^T(8,8) pad; W3^T(8,8) pad; W4^T(c_pad,8) pad]
    v_ref:   (max(8,c_pad), 16) cols = [b1,g1,be1, b2,g2,be2, b3,g3,be3, b4, 0..]
    out_ref: (c_pad, b_tile)    softmax probabilities, classes on sublanes
    acc_ref: (8, 8)  scratch    cols 2l:2l+2 = cross-tile [sum, sumsq] of layer l
    aff_ref: (8, 8)  scratch    cols 2l:2l+2 = folded BN [scale, shift] of layer l
    """
    p = pl.program_id(0)
    t = pl.program_id(1)
    last_t = t == pl.num_programs(1) - 1
    inv_n = 1.0 / float(batch)

    # Static parameter slices (tiny, live in vregs).
    w1 = w_ref[0:8, :]                      # (8, 16)
    w2 = w_ref[8:16, 0:8]                   # (8, 8)
    w3 = w_ref[16:24, 0:8]                  # (8, 8)
    w4 = w_ref[24:24 + c_pad, 0:8]          # (c_pad, 8)

    def vcol(j, rows=8):
        return v_ref[0:rows, j:j + 1]       # (rows, 1), broadcasts over lanes

    b1, g1, be1 = vcol(0), vcol(1), vcol(2)
    b2, g2, be2 = vcol(3), vcol(4), vcol(5)
    b3, g3, be3 = vcol(6), vcol(7), vcol(8)
    b4 = vcol(9, c_pad)

    # (1, b_tile) lane mask of real batch columns in this tile (broadcasts over
    # the 8 sublanes); only used in each layer's statistics pass.
    lane = jax.lax.broadcasted_iota(jnp.int32, (1, b_tile), 1)
    valid = (lane + t * b_tile) < batch

    def accumulate(layer, h):
        c = 2 * layer

        @pl.when(t == 0)
        def _():
            acc_ref[:, c:c + 2] = jnp.zeros((8, 2), jnp.float32)

        hm = jnp.where(valid, h, 0.0)
        acc_ref[:, c:c + 1] += jnp.sum(hm, axis=1, keepdims=True)
        acc_ref[:, c + 1:c + 2] += jnp.sum(hm * hm, axis=1, keepdims=True)

    def finalize(layer, g, be):
        c = 2 * layer

        @pl.when(last_t)
        def _():
            mu = acc_ref[:, c:c + 1] * inv_n
            # One-pass variance (sumsq/n - mu^2); fine at these magnitudes.
            # TODO(synk): switch to a centered / Welford merge if tolerances tighten.
            var = acc_ref[:, c + 1:c + 2] * inv_n - mu * mu
            scale = g * jax.lax.rsqrt(var + EPS)          # folded BN affine
            aff_ref[:, c:c + 1] = scale
            aff_ref[:, c + 1:c + 2] = be - mu * scale

    # Layer-1 pre-BN activations are needed by every pass.  W1 @ x^T is expressed
    # as an A @ B^T dot_general, so the batch-major HBM tile is flipped to
    # feature-major (batch on lanes) inside the MXU/XLU, not in the wrapper.
    h1p = jax.lax.dot_general(w1, x_ref[...], (((1,), (1,)), ((), ())),
                              preferred_element_type=jnp.float32) + b1
    h1p = jnp.maximum(h1p, 0.0)

    @pl.when(p == 0)
    def _pass0():
        accumulate(0, h1p)
        finalize(0, g1, be1)

    @pl.when(p >= 1)
    def _pass1plus():
        h1 = h1p * aff_ref[:, 0:1] + aff_ref[:, 1:2]
        h2p = jnp.maximum(
            jnp.dot(w2, h1, preferred_element_type=jnp.float32) + b2, 0.0)

        @pl.when(p == 1)
        def _pass1():
            accumulate(1, h2p)
            finalize(1, g2, be2)

        @pl.when(p >= 2)
        def _pass2plus():
            h2 = h2p * aff_ref[:, 2:3] + aff_ref[:, 3:4]
            h3p = jnp.maximum(
                jnp.dot(w3, h2, preferred_element_type=jnp.float32) + b3, 0.0)

            @pl.when(p == 2)
            def _pass2():
                accumulate(2, h3p)
                finalize(2, g3, be3)

            @pl.when(p == 3)
            def _pass3():
                h3 = h3p * aff_ref[:, 4:5] + aff_ref[:, 5:6]
                logits = jnp.dot(w4, h3,
                                 preferred_element_type=jnp.float32) + b4
                if c_pad != num_classes:    # keep padded classes out of softmax
                    cls = jax.lax.broadcasted_iota(jnp.int32, (c_pad, 1), 0)
                    logits = jnp.where(cls < num_classes, logits, -1e30)
                m = jnp.max(logits, axis=0, keepdims=True)
                e = jnp.exp(logits - m)
                denom = jnp.sum(e, axis=0, keepdims=True)
                # Exact reciprocal: EUP slack makes it free and keeps row sums
                # at 1 to f32 precision (approx=True tripped the 1e-3 check).
                out_ref[...] = e * pl.reciprocal(denom, approx=False)


def _round_up(n, m):
    return -(-n // m) * m


def _pack_params(params, c_pad):
    """Transpose + zero-pad the 4 weights into one (24+c_pad, 16) slab and the
    10 bias/BN vectors into one (max(8, c_pad), 16) slab of column vectors."""
    def wt(w, rows):
        w = jnp.asarray(w, jnp.float32).T                  # (out, in)
        slab = jnp.zeros((rows, 16), jnp.float32)
        return slab.at[:w.shape[0], :w.shape[1]].set(w)

    w_slab = jnp.concatenate([wt(params["w1"], 8), wt(params["w2"], 8),
                              wt(params["w3"], 8), wt(params["w4"], c_pad)],
                             axis=0)

    fmax = max(8, c_pad)
    vecs = [params["b1"], params["g1"], params["be1"],
            params["b2"], params["g2"], params["be2"],
            params["b3"], params["g3"], params["be3"],
            params["b4"]]
    v_slab = jnp.zeros((fmax, 16), jnp.float32)
    for j, v in enumerate(vecs):
        v = jnp.asarray(v, jnp.float32).reshape(-1)
        v_slab = v_slab.at[:v.shape[0], j].set(v)
    return w_slab, v_slab


def trojan_net_forward(x, params, *, b_tile=None):
    """Forward pass of Trojan_Net_Model (training-mode BatchNorm semantics).

    x: (batch, 16). Returns (batch, combination_number + 1) float32 softmax probs.
    """
    batch = x.shape[0]
    num_classes = params["w4"].shape[1]
    c_pad = _round_up(max(num_classes, 8), 8)

    # Batch tile: lane-dense (multiple of 128), big enough to amortize the
    # ~0.35 us/grid-step overhead, small enough that the per-step working set is
    # a few hundred KiB (v7x has only 64 MiB physical VMEM).
    if b_tile is None:
        b_tile = min(_round_up(batch, 128), 8192)
    assert b_tile % 128 == 0
    b_pad = _round_up(batch, b_tile)
    n_tiles = b_pad // b_tile

    x = jnp.asarray(x, jnp.float32)
    if b_pad != batch:      # zero rows past `batch`; masked out of the BN stats
        x = jnp.zeros((b_pad, 16), jnp.float32).at[:batch].set(x)

    w_slab, v_slab = _pack_params(params, c_pad)

    kernel = functools.partial(_trojan_net_kernel, batch=batch,
                               num_classes=num_classes, c_pad=c_pad,
                               b_tile=b_tile)

    # Per-tile VMEM budget: double-buffered x/out blocks + ~8 live (8, b_tile)
    # activation slabs + logits/exp, plus slack for compiler temporaries.
    est = 4 * b_tile * (2 * 16 + 4 * c_pad + 8 * 8) + (2 << 20)
    vmem_bytes = int(min(max(est, 8 << 20), 32 << 20))

    grid_spec = pltpu.PrefetchScalarGridSpec(
        num_scalar_prefetch=0,
        grid=(4, n_tiles),                   # (BN statistics pass, batch tile)
        in_specs=[
            pl.BlockSpec((b_tile, 16), lambda p, t: (t, 0)),
            pl.BlockSpec(w_slab.shape, lambda p, t: (0, 0)),   # VMEM-resident
            pl.BlockSpec(v_slab.shape, lambda p, t: (0, 0)),   # VMEM-resident
        ],
        out_specs=pl.BlockSpec((c_pad, b_tile), lambda p, t: (0, t)),
        scratch_shapes=[pltpu.VMEM((8, 8), jnp.float32),       # sum / sumsq
                        pltpu.VMEM((8, 8), jnp.float32)],      # scale / shift
    )

    out = pl.pallas_call(
        kernel,
        out_shape=jax.ShapeDtypeStruct((c_pad, b_pad), jnp.float32),
        grid_spec=grid_spec,
        compiler_params=pltpu.CompilerParams(
            # Cross-tile batch statistics + ordered passes => both axes sequential.
            dimension_semantics=("arbitrary", "arbitrary"),
            vmem_limit_bytes=vmem_bytes),
    )(x, w_slab, v_slab)

    # Kernel output is class-major and lane-dense; transpose back to the module's
    # (batch, classes) convention (tiny: classes x batch).
    return out[:num_classes, :batch].T


def init_params(key, combination_number):
    """PyTorch-like init: Linear weights/biases ~ U(-1/sqrt(fan_in), 1/sqrt(fan_in)),
    BatchNorm gamma=1, beta=0."""
    dims = [(16, 8), (8, 8), (8, 8), (8, combination_number + 1)]
    params = {}
    keys = jax.random.split(key, 2 * len(dims))
    for i, (fan_in, fan_out) in enumerate(dims, start=1):
        bound = 1.0 / jnp.sqrt(float(fan_in))
        wk, bk = keys[2 * (i - 1)], keys[2 * (i - 1) + 1]
        params[f"w{i}"] = jax.random.uniform(
            wk, (fan_in, fan_out), jnp.float32, -bound, bound)
        params[f"b{i}"] = jax.random.uniform(
            bk, (1, fan_out), jnp.float32, -bound, bound)
        if i != 4:
            params[f"g{i}"] = jnp.ones((1, fan_out), jnp.float32)
            params[f"be{i}"] = jnp.zeros((1, fan_out), jnp.float32)
    return params


def _reference_forward(x, p):
    """Pure-JAX reference (batch-major, centered biased variance)."""
    hi = jax.lax.Precision.HIGHEST
    h = x.astype(jnp.float32)
    for i in (1, 2, 3):
        h = jnp.maximum(jnp.dot(h, p[f"w{i}"], precision=hi) + p[f"b{i}"], 0.0)
        mu = jnp.mean(h, axis=0, keepdims=True)
        var = jnp.mean((h - mu) ** 2, axis=0, keepdims=True)
        h = (h - mu) / jnp.sqrt(var + EPS) * p[f"g{i}"] + p[f"be{i}"]
    logits = jnp.dot(h, p["w4"], precision=hi) + p["b4"]
    return jax.nn.softmax(logits, axis=-1)


if __name__ == "__main__":
    combination_number = 7            # -> 8 output classes
    key = jax.random.PRNGKey(0)
    pkey, xkey1, xkey2 = jax.random.split(key, 3)
    params = init_params(pkey, combination_number)

    # Small single-tile batch (matches the module's tiny 4x4-trigger inputs).
    batch = 32
    x = jax.random.uniform(xkey1, (batch, 16), jnp.float32)
    out = jax.block_until_ready(trojan_net_forward(x, params))
    ref = _reference_forward(x, params)
    assert out.shape == (batch, combination_number + 1)
    assert jnp.allclose(out, ref, atol=1e-3, rtol=1e-3)
    assert jnp.allclose(jnp.sum(out, axis=-1), 1.0, atol=1e-4)

    # Multi-tile path: 2 batch tiles of 128 with 56 zero-padded columns,
    # exercising the cross-tile BatchNorm statistics accumulation.
    batch2 = 200
    x2 = jax.random.uniform(xkey2, (batch2, 16), jnp.float32)
    out2 = jax.block_until_ready(trojan_net_forward(x2, params, b_tile=128))
    ref2 = _reference_forward(x2, params)
    assert out2.shape == (batch2, combination_number + 1)
    assert jnp.allclose(out2, ref2, atol=1e-3, rtol=1e-3)
    assert jnp.allclose(jnp.sum(out2, axis=-1), 1.0, atol=1e-4)

    print("KERNEL_OK")
</pallas_src>

<mosaic_0001>
module attributes {stable_mosaic.version = 11 : i64} {
  func.func @_trojan_net_kernel(%arg0: i32, %arg1: i32, %arg2: memref<128x16xf32, #tpu.memory_space<vmem>>, %arg3: memref<32x16xf32, #tpu.memory_space<vmem>>, %arg4: memref<8x16xf32, #tpu.memory_space<vmem>>, %arg5: memref<8x128xf32, #tpu.memory_space<vmem>>, %arg6: memref<8x8xf32, #tpu.memory_space<vmem>>, %arg7: memref<8x8xf32, #tpu.memory_space<vmem>>) attributes {dimension_semantics = [#tpu.dimension_semantics<arbitrary>, #tpu.dimension_semantics<arbitrary>], iteration_bounds = array<i64: 4, 1>, scalar_prefetch = 0 : i64, scratch_operands = 2 : i64, tpu.core_type = #tpu.core_type<tc>, window_params = [{transform_indices = @transform_0, window_bounds = array<i64: 128, 16>}, {pipeline_mode = #tpu.pipeline_mode<synchronous>, transform_indices = @transform_1, window_bounds = array<i64: 32, 16>}, {pipeline_mode = #tpu.pipeline_mode<synchronous>, transform_indices = @transform_2, window_bounds = array<i64: 8, 16>}, {transform_indices = @transform_3, window_bounds = array<i64: 8, 128>}]} {
    %c0_i32 = arith.constant 0 : i32
    %0 = arith.cmpi eq, %arg1, %c0_i32 : i32
    %c0 = arith.constant 0 : index
    %c0_0 = arith.constant 0 : index
    %1 = vector.load %arg3[%c0, %c0_0] : memref<32x16xf32, #tpu.memory_space<vmem>>, vector<8x16xf32>
    %c8 = arith.constant 8 : index
    %c0_1 = arith.constant 0 : index
    %2 = vector.load %arg3[%c8, %c0_1] : memref<32x16xf32, #tpu.memory_space<vmem>>, vector<8x8xf32>
    %c16 = arith.constant 16 : index
    %c0_2 = arith.constant 0 : index
    %3 = vector.load %arg3[%c16, %c0_2] : memref<32x16xf32, #tpu.memory_space<vmem>>, vector<8x8xf32>
    %c24 = arith.constant 24 : index
    %c0_3 = arith.constant 0 : index
    %4 = vector.load %arg3[%c24, %c0_3] : memref<32x16xf32, #tpu.memory_space<vmem>>, vector<8x8xf32>
    %c0_4 = arith.constant 0 : index
    %c0_5 = arith.constant 0 : index
    %5 = vector.load %arg4[%c0_4, %c0_5] : memref<8x16xf32, #tpu.memory_space<vmem>>, vector<8x1xf32>
    %c0_6 = arith.constant 0 : index
    %c1 = arith.constant 1 : index
    %6 = vector.load %arg4[%c0_6, %c1] : memref<8x16xf32, #tpu.memory_space<vmem>>, vector<8x1xf32>
    %c0_7 = arith.constant 0 : index
    %c2 = arith.constant 2 : index
    %7 = vector.load %arg4[%c0_7, %c2] : memref<8x16xf32, #tpu.memory_space<vmem>>, vector<8x1xf32>
    %c0_8 = arith.constant 0 : index
    %c3 = arith.constant 3 : index
    %8 = vector.load %arg4[%c0_8, %c3] : memref<8x16xf32, #tpu.memory_space<vmem>>, vector<8x1xf32>
    %c0_9 = arith.constant 0 : index
    %c4 = arith.constant 4 : index
    %9 = vector.load %arg4[%c0_9, %c4] : memref<8x16xf32, #tpu.memory_space<vmem>>, vector<8x1xf32>
    %c0_10 = arith.constant 0 : index
    %c5 = arith.constant 5 : index
    %10 = vector.load %arg4[%c0_10, %c5] : memref<8x16xf32, #tpu.memory_space<vmem>>, vector<8x1xf32>
    %c0_11 = arith.constant 0 : index
    %c6 = arith.constant 6 : index
    %11 = vector.load %arg4[%c0_11, %c6] : memref<8x16xf32, #tpu.memory_space<vmem>>, vector<8x1xf32>
    %c0_12 = arith.constant 0 : index
    %c7 = arith.constant 7 : index
    %12 = vector.load %arg4[%c0_12, %c7] : memref<8x16xf32, #tpu.memory_space<vmem>>, vector<8x1xf32>
    %c0_13 = arith.constant 0 : index
    %c8_14 = arith.constant 8 : index
    %13 = vector.load %arg4[%c0_13, %c8_14] : memref<8x16xf32, #tpu.memory_space<vmem>>, vector<8x1xf32>
    %c0_15 = arith.constant 0 : index
    %c9 = arith.constant 9 : index
    %14 = vector.load %arg4[%c0_15, %c9] : memref<8x16xf32, #tpu.memory_space<vmem>>, vector<8x1xf32>
    %15 = tpu.iota {dimensions = array<i32: 1>} : vector<1x128xi32>
    %c128_i32 = arith.constant 128 : i32
    %16 = arith.muli %arg1, %c128_i32 : i32
    %17 = vector.broadcast %16 : i32 to vector<1x128xi32>
    %18 = arith.addi %15, %17 : vector<1x128xi32>
    %c32_i32 = arith.constant 32 : i32
    %19 = vector.broadcast %c32_i32 : i32 to vector<1x128xi32>
    %20 = arith.cmpi slt, %18, %19 : vector<1x128xi32>
    %c0_16 = arith.constant 0 : index
    %c0_17 = arith.constant 0 : index
    %21 = vector.load %arg2[%c0_16, %c0_17] : memref<128x16xf32, #tpu.memory_space<vmem>>, vector<128x16xf32>
    %cst = arith.constant dense<0.000000e+00> : vector<8x128xf32>
    %22 = tpu.matmul %1, %21, %cst {dimension_numbers = #tpu.dot_dimension_numbers<[1], [1], [0], [0], [0, 0, 1, 0], [], []>} : vector<8x16xf32>, vector<128x16xf32>, vector<8x128xf32> -> vector<8x128xf32>
    %23 = vector.broadcast %5 : vector<8x1xf32> to vector<8x128xf32>
    %24 = arith.addf %22, %23 : vector<8x128xf32>
    %cst_18 = arith.constant 0.000000e+00 : f32
    %25 = vector.broadcast %cst_18 : f32 to vector<8x128xf32>
    %26 = arith.maximumf %24, %25 : vector<8x128xf32>
    %c0_i32_19 = arith.constant 0 : i32
    %27 = arith.cmpi eq, %arg0, %c0_i32_19 : i32
    %28 = arith.extui %27 : i1 to i32
    %c0_i32_20 = arith.constant 0 : i32
    %29 = arith.cmpi ne, %28, %c0_i32_20 : i32
    scf.if %29 {
      %c0_i32_22 = arith.constant 0 : i32
      %33 = arith.cmpi eq, %arg1, %c0_i32_22 : i32
      %34 = arith.extui %33 : i1 to i32
      %c0_i32_23 = arith.constant 0 : i32
      %35 = arith.cmpi ne, %34, %c0_i32_23 : i32
      scf.if %35 {
        %cst_36 = arith.constant 0.000000e+00 : f32
        %53 = vector.broadcast %cst_36 : f32 to vector<8x2xf32>
        %c0_37 = arith.constant 0 : index
        %c0_38 = arith.constant 0 : index
        %54 = vector.load %arg6[%c0_37, %c0_38] : memref<8x8xf32, #tpu.memory_space<vmem>>, vector<8x2xf32>
        tpu.vector_store %arg6[%c0_37, %c0_38], %53 {strides = array<i32>} : memref<8x8xf32, #tpu.memory_space<vmem>>, vector<8x2xf32>,
      } else {
      }
      %cst_24 = arith.constant 0.000000e+00 : f32
      %36 = vector.shape_cast %20 : vector<1x128xi1> to vector<1x128xi1>
      %37 = vector.broadcast %36 : vector<1x128xi1> to vector<8x128xi1>
      %38 = vector.broadcast %cst_24 : f32 to vector<8x128xf32>
      %39 = arith.select %37, %26, %38 : vector<8x128xi1>, vector<8x128xf32>
      %c0_25 = arith.constant 0 : index
      %c0_26 = arith.constant 0 : index
      %40 = vector.load %arg6[%c0_25, %c0_26] : memref<8x8xf32, #tpu.memory_space<vmem>>, vector<8x1xf32>
      %cst_27 = arith.constant dense<0.000000e+00> : vector<8xf32>
      %41 = vector.multi_reduction <add>, %39, %cst_27 [1] : vector<8x128xf32> to vector<8xf32>
      %42 = vector.shape_cast %41 : vector<8xf32> to vector<8x1xf32>
      %43 = arith.addf %40, %42 : vector<8x1xf32>
      %c0_28 = arith.constant 0 : index
      %c0_29 = arith.constant 0 : index
      %44 = vector.load %arg6[%c0_28, %c0_29] : memref<8x8xf32, #tpu.memory_space<vmem>>, vector<8x1xf32>
      tpu.vector_store %arg6[%c0_28, %c0_29], %43 {strides = array<i32>} : memref<8x8xf32, #tpu.memory_space<vmem>>, vector<8x1xf32>,
      %c0_30 = arith.constant 0 : index
      %c1_31 = arith.constant 1 : index
      %45 = vector.load %arg6[%c0_30, %c1_31] : memref<8x8xf32, #tpu.memory_space<vmem>>, vector<8x1xf32>
      %46 = arith.mulf %39, %39 : vector<8x128xf32>
      %cst_32 = arith.constant dense<0.000000e+00> : vector<8xf32>
      %47 = vector.multi_reduction <add>, %46, %cst_32 [1] : vector<8x128xf32> to vector<8xf32>
      %48 = vector.shape_cast %47 : vector<8xf32> to vector<8x1xf32>
      %49 = arith.addf %45, %48 : vector<8x1xf32>
      %c0_33 = arith.constant 0 : index
      %c1_34 = arith.constant 1 : index
      %50 = vector.load %arg6[%c0_33, %c1_34] : memref<8x8xf32, #tpu.memory_space<vmem>>, vector<8x1xf32>
      tpu.vector_store %arg6[%c0_33, %c1_34], %49 {strides = array<i32>} : memref<8x8xf32, #tpu.memory_space<vmem>>, vector<8x1xf32>,
      %51 = arith.extui %0 : i1 to i32
      %c0_i32_35 = arith.constant 0 : i32
      %52 = arith.cmpi ne, %51, %c0_i32_35 : i32
      scf.if %52 {
        %c0_36 = arith.constant 0 : index
        %c0_37 = arith.constant 0 : index
        %53 = vector.load %arg6[%c0_36, %c0_37] : memref<8x8xf32, #tpu.memory_space<vmem>>, vector<8x1xf32>
        %cst_38 = arith.constant 3.125000e-02 : f32
        %54 = vector.broadcast %cst_38 : f32 to vector<8x1xf32>
        %55 = arith.mulf %53, %54 : vector<8x1xf32>
        %c0_39 = arith.constant 0 : index
        %c1_40 = arith.constant 1 : index
        %56 = vector.load %arg6[%c0_39, %c1_40] : memref<8x8xf32, #tpu.memory_space<vmem>>, vector<8x1xf32>
        %cst_41 = arith.constant 3.125000e-02 : f32
        %57 = vector.broadcast %cst_41 : f32 to vector<8x1xf32>
        %58 = arith.mulf %56, %57 : vector<8x1xf32>
        %59 = arith.mulf %55, %55 : vector<8x1xf32>
        %60 = arith.subf %58, %59 : vector<8x1xf32>
        %cst_42 = arith.constant 9.99999974E-6 : f32
        %61 = vector.broadcast %cst_42 : f32 to vector<8x1xf32>
        %62 = arith.addf %60, %61 : vector<8x1xf32>
        %63 = math.rsqrt %62 : vector<8x1xf32>
        %64 = arith.mulf %6, %63 : vector<8x1xf32>
        %c0_43 = arith.constant 0 : index
        %c0_44 = arith.constant 0 : index
        %65 = vector.load %arg7[%c0_43, %c0_44] : memref<8x8xf32, #tpu.memory_space<vmem>>, vector<8x1xf32>
        tpu.vector_store %arg7[%c0_43, %c0_44], %64 {strides = array<i32>} : memref<8x8xf32, #tpu.memory_space<vmem>>, vector<8x1xf32>,
        %66 = arith.mulf %55, %64 : vector<8x1xf32>
        %67 = arith.subf %7, %66 : vector<8x1xf32>
        %c0_45 = arith.constant 0 : index
        %c1_46 = arith.constant 1 : index
        %68 = vector.load %arg7[%c0_45, %c1_46] : memref<8x8xf32, #tpu.memory_space<vmem>>, vector<8x1xf32>
        tpu.vector_store %arg7[%c0_45, %c1_46], %67 {strides = array<i32>} : memref<8x8xf32, #tpu.memory_space<vmem>>, vector<8x1xf32>,
      } else {
      }
    } else {
    }
    %c1_i32 = arith.constant 1 : i32
    %30 = arith.cmpi sge, %arg0, %c1_i32 : i32
    %31 = arith.extui %30 : i1 to i32
    %c0_i32_21 = arith.constant 0 : i32
    %32 = arith.cmpi ne, %31, %c0_i32_21 : i32
    scf.if %32 {
      %c0_22 = arith.constant 0 : index
      %c0_23 = arith.constant 0 : index
      %33 = vector.load %arg7[%c0_22, %c0_23] : memref<8x8xf32, #tpu.memory_space<vmem>>, vector<8x1xf32>
      %34 = vector.broadcast %33 : vector<8x1xf32> to vector<8x128xf32>
      %35 = arith.mulf %26, %34 : vector<8x128xf32>
      %c0_24 = arith.constant 0 : index
      %c1_25 = arith.constant 1 : index
      %36 = vector.load %arg7[%c0_24, %c1_25] : memref<8x8xf32, #tpu.memory_space<vmem>>, vector<8x1xf32>
      %37 = vector.broadcast %36 : vector<8x1xf32> to vector<8x128xf32>
      %38 = arith.addf %35, %37 : vector<8x128xf32>
      %cst_26 = arith.constant dense<0.000000e+00> : vector<8x128xf32>
      %39 = tpu.matmul %2, %38, %cst_26 {dimension_numbers = #tpu.dot_dimension_numbers<[1], [0], [0], [1], [0, 0, 1, 1], [], []>} : vector<8x8xf32>, vector<8x128xf32>, vector<8x128xf32> -> vector<8x128xf32>
      %40 = vector.broadcast %8 : vector<8x1xf32> to vector<8x128xf32>
      %41 = arith.addf %39, %40 : vector<8x128xf32>
      %cst_27 = arith.constant 0.000000e+00 : f32
      %42 = vector.broadcast %cst_27 : f32 to vector<8x128xf32>
      %43 = arith.maximumf %41, %42 : vector<8x128xf32>
      %c1_i32_28 = arith.constant 1 : i32
      %44 = arith.cmpi eq, %arg0, %c1_i32_28 : i32
      %45 = arith.extui %44 : i1 to i32
      %c0_i32_29 = arith.constant 0 : i32
      %46 = arith.cmpi ne, %45, %c0_i32_29 : i32
      scf.if %46 {
        %c0_i32_31 = arith.constant 0 : i32
        %50 = arith.cmpi eq, %arg1, %c0_i32_31 : i32
        %51 = arith.extui %50 : i1 to i32
        %c0_i32_32 = arith.constant 0 : i32
        %52 = arith.cmpi ne, %51, %c0_i32_32 : i32
        scf.if %52 {
          %cst_45 = arith.constant 0.000000e+00 : f32
          %70 = vector.broadcast %cst_45 : f32 to vector<8x2xf32>
          %c0_46 = arith.constant 0 : index
          %c2_47 = arith.constant 2 : index
          %71 = vector.load %arg6[%c0_46, %c2_47] : memref<8x8xf32, #tpu.memory_space<vmem>>, vector<8x2xf32>
          tpu.vector_store %arg6[%c0_46, %c2_47], %70 {strides = array<i32>} : memref<8x8xf32, #tpu.memory_space<vmem>>, vector<8x2xf32>,
        } else {
        }
        %cst_33 = arith.constant 0.000000e+00 : f32
        %53 = vector.shape_cast %20 : vector<1x128xi1> to vector<1x128xi1>
        %54 = vector.broadcast %53 : vector<1x128xi1> to vector<8x128xi1>
        %55 = vector.broadcast %cst_33 : f32 to vector<8x128xf32>
        %56 = arith.select %54, %43, %55 : vector<8x128xi1>, vector<8x128xf32>
        %c0_34 = arith.constant 0 : index
        %c2_35 = arith.constant 2 : index
        %57 = vector.load %arg6[%c0_34, %c2_35] : memref<8x8xf32, #tpu.memory_space<vmem>>, vector<8x1xf32>
        %cst_36 = arith.constant dense<0.000000e+00> : vector<8xf32>
        %58 = vector.multi_reduction <add>, %56, %cst_36 [1] : vector<8x128xf32> to vector<8xf32>
        %59 = vector.shape_cast %58 : vector<8xf32> to vector<8x1xf32>
        %60 = arith.addf %57, %59 : vector<8x1xf32>
        %c0_37 = arith.constant 0 : index
        %c2_38 = arith.constant 2 : index
        %61 = vector.load %arg6[%c0_37, %c2_38] : memref<8x8xf32, #tpu.memory_space<vmem>>, vector<8x1xf32>
        tpu.vector_store %arg6[%c0_37, %c2_38], %60 {strides = array<i32>} : memref<8x8xf32, #tpu.memory_space<vmem>>, vector<8x1xf32>,
        %c0_39 = arith.constant 0 : index
        %c3_40 = arith.constant 3 : index
        %62 = vector.load %arg6[%c0_39, %c3_40] : memref<8x8xf32, #tpu.memory_space<vmem>>, vector<8x1xf32>
        %63 = arith.mulf %56, %56 : vector<8x128xf32>
        %cst_41 = arith.constant dense<0.000000e+00> : vector<8xf32>
        %64 = vector.multi_reduction <add>, %63, %cst_41 [1] : vector<8x128xf32> to vector<8xf32>
        %65 = vector.shape_cast %64 : vector<8xf32> to vector<8x1xf32>
        %66 = arith.addf %62, %65 : vector<8x1xf32>
        %c0_42 = arith.constant 0 : index
        %c3_43 = arith.constant 3 : index
        %67 = vector.load %arg6[%c0_42, %c3_43] : memref<8x8xf32, #tpu.memory_space<vmem>>, vector<8x1xf32>
        tpu.vector_store %arg6[%c0_42, %c3_43], %66 {strides = array<i32>} : memref<8x8xf32, #tpu.memory_space<vmem>>, vector<8x1xf32>,
        %68 = arith.extui %0 : i1 to i32
        %c0_i32_44 = arith.constant 0 : i32
        %69 = arith.cmpi ne, %68, %c0_i32_44 : i32
        scf.if %69 {
          %c0_45 = arith.constant 0 : index
          %c2_46 = arith.constant 2 : index
          %70 = vector.load %arg6[%c0_45, %c2_46] : memref<8x8xf32, #tpu.memory_space<vmem>>, vector<8x1xf32>
          %cst_47 = arith.constant 3.125000e-02 : f32
          %71 = vector.broadcast %cst_47 : f32 to vector<8x1xf32>
          %72 = arith.mulf %70, %71 : vector<8x1xf32>
          %c0_48 = arith.constant 0 : index
          %c3_49 = arith.constant 3 : index
          %73 = vector.load %arg6[%c0_48, %c3_49] : memref<8x8xf32, #tpu.memory_space<vmem>>, vector<8x1xf32>
          %cst_50 = arith.constant 3.125000e-02 : f32
          %74 = vector.broadcast %cst_50 : f32 to vector<8x1xf32>
          %75 = arith.mulf %73, %74 : vector<8x1xf32>
          %76 = arith.mulf %72, %72 : vector<8x1xf32>
          %77 = arith.subf %75, %76 : vector<8x1xf32>
          %cst_51 = arith.constant 9.99999974E-6 : f32
          %78 = vector.broadcast %cst_51 : f32 to vector<8x1xf32>
          %79 = arith.addf %77, %78 : vector<8x1xf32>
          %80 = math.rsqrt %79 : vector<8x1xf32>
          %81 = arith.mulf %9, %80 : vector<8x1xf32>
          %c0_52 = arith.constant 0 : index
          %c2_53 = arith.constant 2 : index
          %82 = vector.load %arg7[%c0_52, %c2_53] : memref<8x8xf32, #tpu.memory_space<vmem>>, vector<8x1xf32>
          tpu.vector_store %arg7[%c0_52, %c2_53], %81 {strides = array<i32>} : memref<8x8xf32, #tpu.memory_space<vmem>>, vector<8x1xf32>,
          %83 = arith.mulf %72, %81 : vector<8x1xf32>
          %84 = arith.subf %10, %83 : vector<8x1xf32>
          %c0_54 = arith.constant 0 : index
          %c3_55 = arith.constant 3 : index
          %85 = vector.load %arg7[%c0_54, %c3_55] : memref<8x8xf32, #tpu.memory_space<vmem>>, vector<8x1xf32>
          tpu.vector_store %arg7[%c0_54, %c3_55], %84 {strides = array<i32>} : memref<8x8xf32, #tpu.memory_space<vmem>>, vector<8x1xf32>,
        } else {
        }
      } else {
      }
      %c2_i32 = arith.constant 2 : i32
      %47 = arith.cmpi sge, %arg0, %c2_i32 : i32
      %48 = arith.extui %47 : i1 to i32
      %c0_i32_30 = arith.constant 0 : i32
      %49 = arith.cmpi ne, %48, %c0_i32_30 : i32
      scf.if %49 {
        %c0_31 = arith.constant 0 : index
        %c2_32 = arith.constant 2 : index
        %50 = vector.load %arg7[%c0_31, %c2_32] : memref<8x8xf32, #tpu.memory_space<vmem>>, vector<8x1xf32>
        %51 = vector.broadcast %50 : vector<8x1xf32> to vector<8x128xf32>
        %52 = arith.mulf %43, %51 : vector<8x128xf32>
        %c0_33 = arith.constant 0 : index
        %c3_34 = arith.constant 3 : index
        %53 = vector.load %arg7[%c0_33, %c3_34] : memref<8x8xf32, #tpu.memory_space<vmem>>, vector<8x1xf32>
        %54 = vector.broadcast %53 : vector<8x1xf32> to vector<8x128xf32>
        %55 = arith.addf %52, %54 : vector<8x128xf32>
        %cst_35 = arith.constant dense<0.000000e+00> : vector<8x128xf32>
        %56 = tpu.matmul %3, %55, %cst_35 {dimension_numbers = #tpu.dot_dimension_numbers<[1], [0], [0], [1], [0, 0, 1, 1], [], []>} : vector<8x8xf32>, vector<8x128xf32>, vector<8x128xf32> -> vector<8x128xf32>
        %57 = vector.broadcast %11 : vector<8x1xf32> to vector<8x128xf32>
        %58 = arith.addf %56, %57 : vector<8x128xf32>
        %cst_36 = arith.constant 0.000000e+00 : f32
        %59 = vector.broadcast %cst_36 : f32 to vector<8x128xf32>
        %60 = arith.maximumf %58, %59 : vector<8x128xf32>
        %c2_i32_37 = arith.constant 2 : i32
        %61 = arith.cmpi eq, %arg0, %c2_i32_37 : i32
        %62 = arith.extui %61 : i1 to i32
        %c0_i32_38 = arith.constant 0 : i32
        %63 = arith.cmpi ne, %62, %c0_i32_38 : i32
        scf.if %63 {
          %c0_i32_40 = arith.constant 0 : i32
          %67 = arith.cmpi eq, %arg1, %c0_i32_40 : i32
          %68 = arith.extui %67 : i1 to i32
          %c0_i32_41 = arith.constant 0 : i32
          %69 = arith.cmpi ne, %68, %c0_i32_41 : i32
          scf.if %69 {
            %cst_54 = arith.constant 0.000000e+00 : f32
            %87 = vector.broadcast %cst_54 : f32 to vector<8x2xf32>
            %c0_55 = arith.constant 0 : index
            %c4_56 = arith.constant 4 : index
            %88 = vector.load %arg6[%c0_55, %c4_56] : memref<8x8xf32, #tpu.memory_space<vmem>>, vector<8x2xf32>
            tpu.vector_store %arg6[%c0_55, %c4_56], %87 {strides = array<i32>} : memref<8x8xf32, #tpu.memory_space<vmem>>, vector<8x2xf32>,
          } else {
          }
          %cst_42 = arith.constant 0.000000e+00 : f32
          %70 = vector.shape_cast %20 : vector<1x128xi1> to vector<1x128xi1>
          %71 = vector.broadcast %70 : vector<1x128xi1> to vector<8x128xi1>
          %72 = vector.broadcast %cst_42 : f32 to vector<8x128xf32>
          %73 = arith.select %71, %60, %72 : vector<8x128xi1>, vector<8x128xf32>
          %c0_43 = arith.constant 0 : index
          %c4_44 = arith.constant 4 : index
          %74 = vector.load %arg6[%c0_43, %c4_44] : memref<8x8xf32, #tpu.memory_space<vmem>>, vector<8x1xf32>
          %cst_45 = arith.constant dense<0.000000e+00> : vector<8xf32>
          %75 = vector.multi_reduction <add>, %73, %cst_45 [1] : vector<8x128xf32> to vector<8xf32>
          %76 = vector.shape_cast %75 : vector<8xf32> to vector<8x1xf32>
          %77 = arith.addf %74, %76 : vector<8x1xf32>
          %c0_46 = arith.constant 0 : index
          %c4_47 = arith.constant 4 : index
          %78 = vector.load %arg6[%c0_46, %c4_47] : memref<8x8xf32, #tpu.memory_space<vmem>>, vector<8x1xf32>
          tpu.vector_store %arg6[%c0_46, %c4_47], %77 {strides = array<i32>} : memref<8x8xf32, #tpu.memory_space<vmem>>, vector<8x1xf32>,
          %c0_48 = arith.constant 0 : index
          %c5_49 = arith.constant 5 : index
          %79 = vector.load %arg6[%c0_48, %c5_49] : memref<8x8xf32, #tpu.memory_space<vmem>>, vector<8x1xf32>
          %80 = arith.mulf %73, %73 : vector<8x128xf32>
          %cst_50 = arith.constant dense<0.000000e+00> : vector<8xf32>
          %81 = vector.multi_reduction <add>, %80, %cst_50 [1] : vector<8x128xf32> to vector<8xf32>
          %82 = vector.shape_cast %81 : vector<8xf32> to vector<8x1xf32>
          %83 = arith.addf %79, %82 : vector<8x1xf32>
          %c0_51 = arith.constant 0 : index
          %c5_52 = arith.constant 5 : index
          %84 = vector.load %arg6[%c0_51, %c5_52] : memref<8x8xf32, #tpu.memory_space<vmem>>, vector<8x1xf32>
          tpu.vector_store %arg6[%c0_51, %c5_52], %83 {strides = array<i32>} : memref<8x8xf32, #tpu.memory_space<vmem>>, vector<8x1xf32>,
          %85 = arith.extui %0 : i1 to i32
          %c0_i32_53 = arith.constant 0 : i32
          %86 = arith.cmpi ne, %85, %c0_i32_53 : i32
          scf.if %86 {
            %c0_54 = arith.constant 0 : index
            %c4_55 = arith.constant 4 : index
            %87 = vector.load %arg6[%c0_54, %c4_55] : memref<8x8xf32, #tpu.memory_space<vmem>>, vector<8x1xf32>
            %cst_56 = arith.constant 3.125000e-02 : f32
            %88 = vector.broadcast %cst_56 : f32 to vector<8x1xf32>
            %89 = arith.mulf %87, %88 : vector<8x1xf32>
            %c0_57 = arith.constant 0 : index
            %c5_58 = arith.constant 5 : index
            %90 = vector.load %arg6[%c0_57, %c5_58] : memref<8x8xf32, #tpu.memory_space<vmem>>, vector<8x1xf32>
            %cst_59 = arith.constant 3.125000e-02 : f32
            %91 = vector.broadcast %cst_59 : f32 to vector<8x1xf32>
            %92 = arith.mulf %90, %91 : vector<8x1xf32>
            %93 = arith.mulf %89, %89 : vector<8x1xf32>
            %94 = arith.subf %92, %93 : vector<8x1xf32>
            %cst_60 = arith.constant 9.99999974E-6 : f32
            %95 = vector.broadcast %cst_60 : f32 to vector<8x1xf32>
            %96 = arith.addf %94, %95 : vector<8x1xf32>
            %97 = math.rsqrt %96 : vector<8x1xf32>
            %98 = arith.mulf %12, %97 : vector<8x1xf32>
            %c0_61 = arith.constant 0 : index
            %c4_62 = arith.constant 4 : index
            %99 = vector.load %arg7[%c0_61, %c4_62] : memref<8x8xf32, #tpu.memory_space<vmem>>, vector<8x1xf32>
            tpu.vector_store %arg7[%c0_61, %c4_62], %98 {strides = array<i32>} : memref<8x8xf32, #tpu.memory_space<vmem>>, vector<8x1xf32>,
            %100 = arith.mulf %89, %98 : vector<8x1xf32>
            %101 = arith.subf %13, %100 : vector<8x1xf32>
            %c0_63 = arith.constant 0 : index
            %c5_64 = arith.constant 5 : index
            %102 = vector.load %arg7[%c0_63, %c5_64] : memref<8x8xf32, #tpu.memory_space<vmem>>, vector<8x1xf32>
            tpu.vector_store %arg7[%c0_63, %c5_64], %101 {strides = array<i32>} : memref<8x8xf32, #tpu.memory_space<vmem>>, vector<8x1xf32>,
          } else {
          }
        } else {
        }
        %c3_i32 = arith.constant 3 : i32
        %64 = arith.cmpi eq, %arg0, %c3_i32 : i32
        %65 = arith.extui %64 : i1 to i32
        %c0_i32_39 = arith.constant 0 : i32
        %66 = arith.cmpi ne, %65, %c0_i32_39 : i32
        scf.if %66 {
          %c0_40 = arith.constant 0 : index
          %c4_41 = arith.constant 4 : index
          %67 = vector.load %arg7[%c0_40, %c4_41] : memref<8x8xf32, #tpu.memory_space<vmem>>, vector<8x1xf32>
          %68 = vector.broadcast %67 : vector<8x1xf32> to vector<8x128xf32>
          %69 = arith.mulf %60, %68 : vector<8x128xf32>
          %c0_42 = arith.constant 0 : index
          %c5_43 = arith.constant 5 : index
          %70 = vector.load %arg7[%c0_42, %c5_43] : memref<8x8xf32, #tpu.memory_space<vmem>>, vector<8x1xf32>
          %71 = vector.broadcast %70 : vector<8x1xf32> to vector<8x128xf32>
          %72 = arith.addf %69, %71 : vector<8x128xf32>
          %cst_44 = arith.constant dense<0.000000e+00> : vector<8x128xf32>
          %73 = tpu.matmul %4, %72, %cst_44 {dimension_numbers = #tpu.dot_dimension_numbers<[1], [0], [0], [1], [0, 0, 1, 1], [], []>} : vector<8x8xf32>, vector<8x128xf32>, vector<8x128xf32> -> vector<8x128xf32>
          %74 = vector.broadcast %14 : vector<8x1xf32> to vector<8x128xf32>
          %75 = arith.addf %73, %74 : vector<8x128xf32>
          %cst_45 = arith.constant dense<0xFF800000> : vector<128xf32>
          %76 = vector.multi_reduction <maximumf>, %75, %cst_45 [0] : vector<8x128xf32> to vector<128xf32>
          %77 = vector.shape_cast %76 : vector<128xf32> to vector<1x128xf32>
          %78 = vector.broadcast %77 : vector<1x128xf32> to vector<8x128xf32>
          %79 = arith.subf %75, %78 : vector<8x128xf32>
          %80 = math.exp %79 : vector<8x128xf32>
          %cst_46 = arith.constant dense<0.000000e+00> : vector<128xf32>
          %81 = vector.multi_reduction <add>, %80, %cst_46 [0] : vector<8x128xf32> to vector<128xf32>
          %82 = vector.shape_cast %81 : vector<128xf32> to vector<1x128xf32>
          %83 = tpu.reciprocal %82 : vector<1x128xf32> -> vector<1x128xf32>
          %84 = vector.broadcast %83 : vector<1x128xf32> to vector<8x128xf32>
          %85 = arith.mulf %80, %84 : vector<8x128xf32>
          %c0_47 = arith.constant 0 : index
          %c0_48 = arith.constant 0 : index
          %86 = vector.load %arg5[%c0_47, %c0_48] : memref<8x128xf32, #tpu.memory_space<vmem>>, vector<8x128xf32>
          tpu.vector_store %arg5[%c0_47, %c0_48], %85 {strides = array<i32>} : memref<8x128xf32, #tpu.memory_space<vmem>>, vector<8x128xf32>,
        } else {
        }
      } else {
      }
    } else {
    }
    return
  }
  func.func @transform_0(%arg0: i32, %arg1: i32) -> (i32, i32) {
    %c0_i32 = arith.constant 0 : i32
    %c0_i32_0 = arith.constant 0 : i32
    return %arg1, %c0_i32 : i32, i32
  }
  func.func @transform_1(%arg0: i32, %arg1: i32) -> (i32, i32) {
    %c0_i32 = arith.constant 0 : i32
    %c0_i32_0 = arith.constant 0 : i32
    %c0_i32_1 = arith.constant 0 : i32
    return %c0_i32, %c0_i32_0 : i32, i32
  }
  func.func @transform_2(%arg0: i32, %arg1: i32) -> (i32, i32) {
    %c0_i32 = arith.constant 0 : i32
    %c0_i32_0 = arith.constant 0 : i32
    %c0_i32_1 = arith.constant 0 : i32
    return %c0_i32, %c0_i32_0 : i32, i32
  }
  func.func @transform_3(%arg0: i32, %arg1: i32) -> (i32, i32) {
    %c0_i32 = arith.constant 0 : i32
    %c0_i32_0 = arith.constant 0 : i32
    return %c0_i32, %arg1 : i32, i32
  }
}

</mosaic_0001>

<bundles_post_ra>
// kernel: tpu_custom_call.1
= control target key start
LH: loop header
LB: loop body
LE: loop exit
PB: predicated region body
PF: predicated region fallthrough
CT: control target
= control target key end

     0   :  { %8 = vsyncpa [#allocation5], 0  ;;  %s920_s12 = smov 0   ;;  %s922_s13 = smov 0   ;;  %s1107_s0 = inlined_call_operand.vmem [shape: f32[128,16], index: 0, kind: input, shape index: {}]   ;;  %s1108_s1 = inlined_call_operand.vmem [shape: f32[32,16], index: 1, kind: input, shape index: {}]   ;;  %s1109_s2 = inlined_call_operand.vmem [shape: f32[8,16], index: 2, kind: input, shape index: {}]   ;;  %s1110_s3 = inlined_call_operand.hbm [shape: f32[8,128], index: 3, kind: output, shape index: {}]  }
   0x1   :  { %s924_s14 = smov 0  }
   0x2 LB: > { %s709_s15 = sadd.s32 4294967295, %s874_s14   ;;  %s26_s16 = sadd.s32 1, %s870_s13  ;;  %s874_s14 = sphi %s924_s14, %s14_s14   ;;  %s870_s13 = sphi %s922_s13, %s1112_s13   ;;  %s866_s12 = sphi %s920_s12, %s1111_s12  }
   0x3   : > { %p28_p0 = scmp.ge.s32.totalorder %s26_s16, 4  ;;  %p712_p1 = scmp.ge.s32.totalorder %s874_s14, 1 }
   0x4   : > { %p151_p2 = scmp.lt.s32.totalorder %s874_s14, 5 }
   0x5   : > { %s1114_s16 = smov (%p28_p0, %s26_s16), 0 }
   0x6   : > { %p152_p3 = pnand %p712_p1, %p151_p2 }
   0x7   : > { %p730_p4 = scmp.ne.s32.totalorder (!%p152_p3), %s866_s12, 0 }
   0x8   : > { %155 = sbr.rel (%p152_p3) target bundleno = 3041 (0xbe1), region = 32 }
   0xd   : > { %v944_v0 = vld [vmem:[%s1108_s1 + $0x8] sm:$0xff]  ;;  %v949_v1 = vld [vmem:[%s1108_s1 + $0x10] sm:$0xff]  ;;  %v954_v2 = vld [vmem:[%s1108_s1 + $0x18] sm:$0xff]  ;;  %v182_v3 = vlaneseq  ;;  %vm209_vm0 = vcmask 130048   ;;  %v876_v15 = vmov 0   ;;  %s878_s10 = smov (!%p730_p4), 1  }
   0xe   : > { %v203_v4 = vld [vmem:[%s1107_s0 + $0x78] sm:$0xff]  ;;  %v202_v6 = vld [vmem:[%s1107_s0 + $0x70] sm:$0xff]  ;;  %v201_v7 = vld [vmem:[%s1107_s0 + $0x68] sm:$0xff]  ;;  %797 = vset.pattern.permute.xlu0 %v876_v15  ;;  %s879_s11 = smov (!%p730_p4), 127   ;;  %s880_s17 = smov (!%p730_p4), 2  }
   0xf   : > { %v959_v5 = vand.u32 127, %v182_v3  ;;  %713 = vmatpush.xpose.msk.msra.mxu0 %vm209_vm0, %v203_v4  ;;  %v200_v8 = vld [vmem:[%s1107_s0 + $0x60] sm:$0xff]  ;;  %v199_v9 = vld [vmem:[%s1107_s0 + $0x58] sm:$0xff]  ;;  %v198_v10 = vld [vmem:[%s1107_s0 + $0x50] sm:$0xff] }
  0x10   : > { %v197_v11 = vld [vmem:[%s1107_s0 + $0x48] sm:$0xff]  ;;  %v196_v12 = vld [vmem:[%s1107_s0 + $0x40] sm:$0xff]  ;;  %v195_v13 = vld [vmem:[%s1107_s0 + $0x38] sm:$0xff] }
  0x11   : > { %vm187_vm1 = vcmp.lt.s32.totalorder %v959_v5, 32  ;;  %v997_v14 = vld [vmem:[%s1109_s2] sm:$0xff]  ;;  %v194_v16 = vld [vmem:[%s1107_s0 + $0x30] sm:$0xff]  ;;  %v193_v17 = vld [vmem:[%s1107_s0 + $0x28] sm:$0xff] }
  0x12   : > { %206 = vperm.xlu0 %797, %v997_v14   ;;  %v192_v18 = vld [vmem:[%s1107_s0 + $0x20] sm:$0xff]  ;;  %v191_v19 = vld [vmem:[%s1107_s0 + $0x18] sm:$0xff]  ;;  %v190_v20 = vld [vmem:[%s1107_s0 + $0x10] sm:$0xff] }
  0x13   : > { %714 = vmatpush.xpose.msk.msra.mxu0 %vm209_vm0, %v202_v6  ;;  %v189_v21 = vld [vmem:[%s1107_s0 + $0x8] sm:$0xff]  ;;  %v188_v22 = vld [vmem:[%s1107_s0] sm:$0xff] }
  0x14   : > { %v177_v23 = vld [vmem:[%s1108_s1] sm:$0xff] }
  0x17   : > { %715 = vmatpush.xpose.msk.msra.mxu0 %vm209_vm0, %v201_v7 }
  0x1b   : > { %716 = vmatpush.xpose.msk.msra.mxu0 %vm209_vm0, %v200_v8 }
  0x1f   : > { %717 = vmatpush.xpose.msk.msra.mxu0 %vm209_vm0, %v199_v9 }
  0x23   : > { %718 = vmatpush.xpose.msk.msra.mxu0 %vm209_vm0, %v198_v10 }
  0x27   : > { %719 = vmatpush.xpose.msk.msra.mxu0 %vm209_vm0, %v197_v11 }
  0x2b   : > { %720 = vmatpush.xpose.msk.msra.mxu0 %vm209_vm0, %v196_v12 }
  0x2f   : > { %721 = vmatpush.xpose.msk.msra.mxu0 %vm209_vm0, %v195_v13 }
  0x33   : > { %722 = vmatpush.xpose.msk.msra.mxu0 %vm209_vm0, %v194_v16 }
  0x37   : > { %723 = vmatpush.xpose.msk.msra.mxu0 %vm209_vm0, %v193_v17 }
  0x3b   : > { %724 = vmatpush.xpose.msk.msra.mxu0 %vm209_vm0, %v192_v18 }
  0x3f   : > { %725 = vmatpush.xpose.msk.msra.mxu0 %vm209_vm0, %v191_v19 }
  0x43   : > { %726 = vmatpush.xpose.msk.msra.mxu0 %vm209_vm0, %v190_v20 }
  0x47   : > { %727 = vmatpush.xpose.msk.msra.mxu0 %vm209_vm0, %v189_v21 }
  0x4b   : > { %728 = vmatpush.xpose.msk.msra.mxu0 %vm209_vm0, %v188_v22 }
  0x4e   : > { %729 = vmatmul.msk.f32.vlgmr.msra.gmra.mxu0 %vm209_vm0, %v177_v23 }
  0x84   : > { %v207_v24 = vpop.permute.xlu0 %206 }
  0xca   : > { %285 = sbr.rel (%p730_p4) target bundleno = 790 (0x316), region = 36 }
  0xcb   : > { %v278_v25 = vpop.f32.mrf.mxu0 }
  0xcc   : > { %v1033_v26 = vadd.f32 %v278_v25, %v207_v24 }
  0xce   : > { %v281_v27 = vmax.f32 %v1033_v26, 0.0 }
  0xcf   : > { %vm289_vm2 = vcmask 15360   ;;  %v877_v30 = vmov 0.0   ;;  %vm298_vm3 = vcmask 7168   ;;  %vm305_vm4 = vcmask 15368  }
  0xd0   : > { %v293_v28 = vsel %vm187_vm1, %v281_v27, 0.0  ;;  %290 = vst.msk [vmem:[#allocation2] sm:$0xff] %vm289_vm2, %v877_v30 }
  0xd1   : > { %295 = vadd.xlane.f32.xlu0 %v293_v28  ;;  %v301_v29 = vmul.f32 %v293_v28, %v293_v28 }
  0xd7   : > { %v294_v31 = vld [vmem:[#allocation2] sm:$0xff] }
  0xd9   : > { %302 = vadd.xlane.f32.xlu0 %v301_v29 }
 0x144   : > { %v296_v32 = vpop.xlane.xlu0 %295 }
 0x145   : > { %v297_v33 = vadd.f32 %v296_v32, %v294_v31 }
 0x147   : > { %299 = vst.msk [vmem:[#allocation2] sm:$0xff] %vm298_vm3, %v297_v33 }
 0x14c   : > { %v303_v34 = vpop.xlane.xlu0 %302 }
 0x14e   : > { %v300_v35 = vld [vmem:[#allocation2] sm:$0xff] }
 0x14f   : > { %v304_v36 = vadd.f32 %v303_v34, %v300_v35 }
 0x151   : > { %306 = vst.msk [vmem:[#allocation2] sm:$0xff] %vm305_vm4, %v304_v36 }
 0x158   : > { %v310_v37 = vld [vmem:[#allocation2] sm:$0xff] }
 0x159   : > { %v311_v38 = vmul.f32 0.03125, %v310_v37 }
 0x15b   : > { %v312_v39 = vmul.f32 %v311_v38, %v311_v38 }
 0x15d   : > { %314 = vrot.lane.b32.xlu1 %v312_v39, %s878_s10 }
 0x1cf   : > { %v315_v40 = vpop.permute.xlu1 %314 }
 0x1d0   : > { %v317_v41 = vsub.f32 %v311_v38, %v315_v40 }
 0x1d2   : > { %v318_v42 = vadd.f32 1e-05, %v317_v41 }
 0x1d4   : > { %798 = vrsqrt.f32 %v318_v42  ;;  %vm325_vm6 = vweird.f32 %v318_v42 }
 0x1da   : > { %v799_v43 = vpop.eup %798 }
 0x1db   : > { %v320_v44 = vmul.f32 %v799_v43, %v318_v42  ;;  %vm326_vm5 = vweird.f32 %v799_v43 }
 0x1dc   : > { %vm327_vm7 = vmor %vm325_vm6, %vm326_vm5 }
 0x1dd   : > { %v321_v45 = vmul.f32 %v799_v43, %v320_v44 }
 0x1df   : > { %v322_v46 = vmul.f32 0.5, %v321_v45 }
 0x1e1   : > { %v323_v47 = vsub.f32 1.5, %v322_v46 }
 0x1e3   : > { %v324_v48 = vmul.f32 %v799_v43, %v323_v47 }
 0x1e5   : > { %v328_v49 = vsel %vm327_vm7, %v799_v43, %v324_v48 }
 0x1e6   : > { %v329_v50 = vmul.f32 %v328_v49, %v997_v14 }
 0x1e8   : > { %331 = vrot.lane.b32.xlu1 %v329_v50, %s879_s11 }
 0x25a   : > { %v332_v51 = vpop.permute.xlu1 %331 }
 0x25b   : > { %334 = vst.msk [vmem:[#allocation3] sm:$0xff] %vm298_vm3, %v332_v51  ;;  %v335_v52 = vmul.f32 %v332_v51, %v311_v38 }
 0x25d   : > { %337 = vrot.lane.b32.xlu2 %v335_v52, %s880_s17 }
 0x2b7   : > { %v338_v53 = vpop.permute.xlu2 %337 }
 0x2b8   : > { %v340_v54 = vsub.f32 %v997_v14, %v338_v53 }
 0x2ba   : > { %342 = vrot.lane.b32.xlu2 %v340_v54, %s879_s11 }
 0x314   : > { %v343_v55 = vpop.permute.xlu2 %342 }
 0x315   : > { %345 = vst.msk [vmem:[#allocation3] sm:$0xff] %vm305_vm4, %v343_v55 }
 0x316 PF: > { %p731_p5 = scmp.lt.s32.totalorder %s866_s12, 1 }
 0x317   : > { %p733_p6 = scmp.ne.s32.totalorder (!%p731_p5), %s866_s12, 1 }
 0x318   : > { %349 = sbr.rel (%p731_p5) target bundleno = 3035 (0xbdb), region = 48 }
 0x31d   : > { %v350_v56 = vld [vmem:[#allocation3] sm:$0xff]  ;;  %v881_v57 = vmov 0   ;;  %v882_v58 = vmov 1   ;;  %v883_v59 = vmov 3   ;;  %vm366_vm8 = vcmask 64512   ;;  %s885_s18 = smov (!%p733_p6), 1  }
 0x31e   : > { %800 = vset.pattern.permute.xlu0 %v881_v57  ;;  %802 = vset.pattern.permute.xlu1 %v883_v59  ;;  %s886_s19 = smov (!%p733_p6), 126   ;;  %s887_s20 = smov (!%p733_p6), 3  }
 0x31f   : > { %353 = vperm.xlu0 %800, %v350_v56   ;;  %363 = vperm.xlu1 %802, %v997_v14  }
 0x327   : > { %801 = vset.pattern.permute.xlu0 %v882_v58 }
 0x328   : > { %358 = vperm.xlu0 %801, %v350_v56  }
 0x330   : > { %803 = vset.pattern.permute.xlu0 %v883_v59 }
 0x391   : > { %v354_v60 = vpop.permute.xlu0 %353  ;;  %v364_v3 = vpop.permute.xlu1 %363 }
 0x392   : > { %v356_v61 = vmul.f32 %v354_v60, %v281_v27 }
 0x39a   : > { %v359_v62 = vpop.permute.xlu0 %358 }
 0x39b   : > { %v361_v63 = vadd.f32 %v359_v62, %v356_v61 }
 0x39d   : > { %385 = vmatpush.msra.mxu0 %v361_v63 }
 0x39e   : > { %732 = vmatmul.msk.f32.vlgmr.msra.gmra.mxu0 %vm366_vm8, %v944_v0 }
 0x41a   : > { %394 = sbr.rel (%p733_p6) target bundleno = 1753 (0x6d9), region = 52 }
 0x41b   : > { %v387_v4 = vpop.f32.mrf.mxu0 }
 0x41c   : > { %v1053_v6 = vadd.f32 %v387_v4, %v364_v3 }
 0x41e   : > { %v390_v7 = vmax.f32 %v1053_v6, 0.0 }
 0x41f   : > { %vm398_vm9 = vcmask 31760   ;;  %v884_v10 = vmov 0.0   ;;  %vm407_vm10 = vcmask 23568   ;;  %vm414_vm11 = vcmask 31768  }
 0x420   : > { %v402_v8 = vsel %vm187_vm1, %v390_v7, 0.0  ;;  %399 = vst.msk [vmem:[#allocation2] sm:$0xff] %vm398_vm9, %v884_v10 }
 0x421   : > { %404 = vadd.xlane.f32.xlu0 %v402_v8  ;;  %v410_v9 = vmul.f32 %v402_v8, %v402_v8 }
 0x427   : > { %v403_v0 = vld [vmem:[#allocation2] sm:$0xff] }
 0x429   : > { %411 = vadd.xlane.f32.xlu0 %v410_v9 }
 0x494   : > { %v405_v11 = vpop.xlane.xlu0 %404 }
 0x495   : > { %v406_v12 = vadd.f32 %v405_v11, %v403_v0 }
 0x497   : > { %408 = vst.msk [vmem:[#allocation2] sm:$0xff] %vm407_vm10, %v406_v12 }
 0x49c   : > { %v412_v13 = vpop.xlane.xlu0 %411 }
 0x49e   : > { %v409_v15 = vld [vmem:[#allocation2] sm:$0xff] }
 0x49f   : > { %v413_v16 = vadd.f32 %v412_v13, %v409_v15 }
 0x4a1   : > { %415 = vst.msk [vmem:[#allocation2] sm:$0xff] %vm414_vm11, %v413_v16 }
 0x4a8   : > { %v419_v17 = vld [vmem:[#allocation2] sm:$0xff] }
 0x4a9   : > { %v420_v18 = vmul.f32 0.03125, %v419_v17 }
 0x4ab   : > { %v421_v19 = vmul.f32 %v420_v18, %v420_v18 }
 0x4ad   : > { %423 = vrot.lane.b32.xlu1 %v421_v19, %s885_s18 }
 0x51f   : > { %v424_v20 = vpop.permute.xlu1 %423 }
 0x520   : > { %v426_v21 = vsub.f32 %v420_v18, %v424_v20 }
 0x522   : > { %v427_v22 = vadd.f32 1e-05, %v426_v21 }
 0x524   : > { %804 = vrsqrt.f32 %v427_v22  ;;  %vm434_vm13 = vweird.f32 %v427_v22 }
 0x52a   : > { %v805_v23 = vpop.eup %804 }
 0x52b   : > { %v429_v24 = vmul.f32 %v805_v23, %v427_v22  ;;  %vm435_vm12 = vweird.f32 %v805_v23 }
 0x52c   : > { %vm436_vm14 = vmor %vm434_vm13, %vm435_vm12 }
 0x52d   : > { %v430_v25 = vmul.f32 %v805_v23, %v429_v24 }
 0x52f   : > { %v431_v26 = vmul.f32 0.5, %v430_v25 }
 0x531   : > { %v432_v27 = vsub.f32 1.5, %v431_v26 }
 0x533   : > { %v433_v28 = vmul.f32 %v805_v23, %v432_v27 }
 0x535   : > { %v437_v29 = vsel %vm436_vm14, %v805_v23, %v433_v28 }
 0x536   : > { %439 = vrot.lane.b32.xlu1 %v437_v29, %s885_s18 }
 0x5a8   : > { %v440_v30 = vpop.permute.xlu1 %439 }
 0x5a9   : > { %v442_v31 = vmul.f32 %v440_v30, %v997_v14 }
 0x5ab   : > { %444 = vrot.lane.b32.xlu2 %v442_v31, %s886_s19 }
 0x605   : > { %v445_v32 = vpop.permute.xlu2 %444 }
 0x606   : > { %447 = vst.msk [vmem:[#allocation3] sm:$0xff] %vm407_vm10, %v445_v32  ;;  %v448_v33 = vmul.f32 %v445_v32, %v420_v18 }
 0x608   : > { %450 = vrot.lane.b32.xlu2 %v448_v33, %s887_s20 }
 0x662   : > { %v451_v34 = vpop.permute.xlu2 %450 }
 0x663   : > { %v453_v35 = vsub.f32 %v997_v14, %v451_v34 }
 0x665   : > { %455 = vrot.lane.b32.xlu0 %v453_v35, %s886_s19 }
 0x6d7   : > { %v456_v36 = vpop.permute.xlu0 %455 }
 0x6d8   : > { %458 = vst.msk [vmem:[#allocation3] sm:$0xff] %vm414_vm11, %v456_v36 }
 0x6d9 PF: > { %p734_p7 = scmp.lt.s32.totalorder %s866_s12, 2 }
 0x6da   : > { %p736_p8 = scmp.ne.s32.totalorder (!%p734_p7), %s866_s12, 2 }
 0x6db   : > { %462 = sbr.rel (%p734_p7) target bundleno = 3035 (0xbdb), region = 64 }
 0x6e0   : > { %v463_v37 = vld [vmem:[#allocation3] sm:$0xff]  ;;  %v888_v38 = vmov 2   ;;  %v889_v39 = vmov 3   ;;  %v890_v40 = vmov 6   ;;  %s892_s21 = smov (!%p736_p8), 1   ;;  %s893_s22 = smov (!%p736_p8), 2  }
 0x6e1   : > { %806 = vset.pattern.permute.xlu0 %v888_v38  ;;  %808 = vset.pattern.permute.xlu1 %v890_v40  ;;  %s894_s23 = smov (!%p736_p8), 125   ;;  %s895_s24 = smov (!%p736_p8), 4  }
 0x6e2   : > { %466 = vperm.xlu0 %806, %v463_v37   ;;  %476 = vperm.xlu1 %808, %v997_v14  }
 0x6ea   : > { %807 = vset.pattern.permute.xlu0 %v889_v39 }
 0x6eb   : > { %471 = vperm.xlu0 %807, %v463_v37  }
 0x6f3   : > { %809 = vset.pattern.permute.xlu0 %v890_v40 }
 0x754   : > { %v467_v41 = vpop.permute.xlu0 %466  ;;  %v477_v45 = vpop.permute.xlu1 %476 }
 0x755   : > { %v469_v42 = vmul.f32 %v467_v41, %v390_v7 }
 0x75d   : > { %v472_v43 = vpop.permute.xlu0 %471 }
 0x75e   : > { %v474_v44 = vadd.f32 %v472_v43, %v469_v42 }
 0x760   : > { %497 = vmatpush.msra.mxu0 %v474_v44 }
 0x761   : > { %735 = vmatmul.msk.f32.vlgmr.msra.gmra.mxu0 %vm366_vm8, %v949_v1 }
 0x7dd   : > { %506 = sbr.rel (%p736_p8) target bundleno = 2716 (0xa9c), region = 68 }
 0x7de   : > { %v499_v46 = vpop.f32.mrf.mxu0 }
 0x7df   : > { %v1073_v47 = vadd.f32 %v499_v46, %v477_v45 }
 0x7e1   : > { %v502_v48 = vmax.f32 %v1073_v47, 0.0 }
 0x7e2   : > { %vm510_vm15 = vcmask 48160   ;;  %v891_v51 = vmov 0.0   ;;  %vm519_vm0 = vcmask 39968   ;;  %vm526_vm2 = vcmask 48168  }
 0x7e3   : > { %v514_v49 = vsel %vm187_vm1, %v502_v48, 0.0  ;;  %511 = vst.msk [vmem:[#allocation2] sm:$0xff] %vm510_vm15, %v891_v51 }
 0x7e4   : > { %516 = vadd.xlane.f32.xlu0 %v514_v49  ;;  %v522_v50 = vmul.f32 %v514_v49, %v514_v49 }
 0x7ea   : > { %v515_v1 = vld [vmem:[#allocation2] sm:$0xff] }
 0x7ec   : > { %523 = vadd.xlane.f32.xlu0 %v522_v50 }
 0x857   : > { %v517_v52 = vpop.xlane.xlu0 %516 }
 0x858   : > { %v518_v53 = vadd.f32 %v517_v52, %v515_v1 }
 0x85a   : > { %520 = vst.msk [vmem:[#allocation2] sm:$0xff] %vm519_vm0, %v518_v53 }
 0x85f   : > { %v524_v54 = vpop.xlane.xlu0 %523 }
 0x861   : > { %v521_v55 = vld [vmem:[#allocation2] sm:$0xff] }
 0x862   : > { %v525_v56 = vadd.f32 %v524_v54, %v521_v55 }
 0x864   : > { %527 = vst.msk [vmem:[#allocation2] sm:$0xff] %vm526_vm2, %v525_v56 }
 0x86b   : > { %v531_v5 = vld [vmem:[#allocation2] sm:$0xff] }
 0x86c   : > { %v532_v57 = vmul.f32 0.03125, %v531_v5 }
 0x86e   : > { %v533_v58 = vmul.f32 %v532_v57, %v532_v57 }
 0x870   : > { %535 = vrot.lane.b32.xlu1 %v533_v58, %s892_s21 }
 0x8e2   : > { %v536_v59 = vpop.permute.xlu1 %535 }
 0x8e3   : > { %v538_v60 = vsub.f32 %v532_v57, %v536_v59 }
 0x8e5   : > { %v539_v61 = vadd.f32 1e-05, %v538_v60 }
 0x8e7   : > { %810 = vrsqrt.f32 %v539_v61  ;;  %vm546_vm3 = vweird.f32 %v539_v61 }
 0x8ed   : > { %v811_v62 = vpop.eup %810 }
 0x8ee   : > { %v541_v63 = vmul.f32 %v811_v62, %v539_v61  ;;  %vm547_vm1 = vweird.f32 %v811_v62 }
 0x8ef   : > { %vm548_vm4 = vmor %vm546_vm3, %vm547_vm1 }
 0x8f0   : > { %v542_v3 = vmul.f32 %v811_v62, %v541_v63 }
 0x8f2   : > { %v543_v4 = vmul.f32 0.5, %v542_v3 }
 0x8f4   : > { %v544_v6 = vsub.f32 1.5, %v543_v4 }
 0x8f6   : > { %v545_v7 = vmul.f32 %v811_v62, %v544_v6 }
 0x8f8   : > { %v549_v8 = vsel %vm548_vm4, %v811_v62, %v545_v7 }
 0x8f9   : > { %551 = vrot.lane.b32.xlu1 %v549_v8, %s893_s22 }
 0x96b   : > { %v552_v9 = vpop.permute.xlu1 %551 }
 0x96c   : > { %v554_v10 = vmul.f32 %v552_v9, %v997_v14 }
 0x96e   : > { %556 = vrot.lane.b32.xlu2 %v554_v10, %s894_s23 }
 0x9c8   : > { %v557_v0 = vpop.permute.xlu2 %556 }
 0x9c9   : > { %559 = vst.msk [vmem:[#allocation3] sm:$0xff] %vm519_vm0, %v557_v0  ;;  %v560_v11 = vmul.f32 %v557_v0, %v532_v57 }
 0x9cb   : > { %562 = vrot.lane.b32.xlu2 %v560_v11, %s895_s24 }
 0xa25   : > { %v563_v12 = vpop.permute.xlu2 %562 }
 0xa26   : > { %v565_v13 = vsub.f32 %v997_v14, %v563_v12 }
 0xa28   : > { %567 = vrot.lane.b32.xlu0 %v565_v13, %s894_s23 }
 0xa9a   : > { %v568_v15 = vpop.permute.xlu0 %567 }
 0xa9b   : > { %570 = vst.msk [vmem:[#allocation3] sm:$0xff] %vm526_vm2, %v568_v15 }
 0xa9c PF: > { %p737_p9 = scmp.ne.s32.totalorder %s866_s12, 3 }
 0xa9e   : > { %574 = sbr.rel (%p737_p9) target bundleno = 3035 (0xbdb), region = 80 }
 0xaa3   : > { %v575_v16 = vld [vmem:[#allocation3] sm:$0xff]  ;;  %v896_v17 = vmov 4   ;;  %v897_v18 = vmov 5   ;;  %v898_v19 = vmov 9  }
 0xaa4   : > { %812 = vset.pattern.permute.xlu0 %v896_v17  ;;  %814 = vset.pattern.permute.xlu1 %v898_v19 }
 0xaa5   : > { %578 = vperm.xlu0 %812, %v575_v16   ;;  %588 = vperm.xlu1 %814, %v997_v14  }
 0xaad   : > { %813 = vset.pattern.permute.xlu0 %v897_v18 }
 0xaae   : > { %583 = vperm.xlu0 %813, %v575_v16  }
 0xab6   : > { %815 = vset.pattern.permute.xlu0 %v898_v19 }
 0xb17   : > { %v579_v20 = vpop.permute.xlu0 %578  ;;  %v589_v24 = vpop.permute.xlu1 %588 }
 0xb18   : > { %v581_v21 = vmul.f32 %v579_v20, %v502_v48 }
 0xb20   : > { %v584_v22 = vpop.permute.xlu0 %583 }
 0xb21   : > { %v586_v23 = vadd.f32 %v584_v22, %v581_v21 }
 0xb23   : > { %609 = vmatpush.msra.mxu0 %v586_v23 }
 0xb24   : > { %738 = vmatmul.msk.f32.vlgmr.msra.gmra.mxu0 %vm366_vm8, %v954_v2 }
 0xba1   : > { %v611_v25 = vpop.f32.mrf.mxu0 }
 0xba2   : > { %v612_v26 = vadd.f32 %v611_v25, %v589_v24 }
 0xba4   : > { %v614_v27 = vrot.slane %v612_v26, 4 }
 0xba6   : > { %v615_v28 = vmax.f32 %v612_v26, %v614_v27 }
 0xba8   : > { %v616_v29 = vrot.slane %v615_v28, 2 }
 0xbaa   : > { %v617_v30 = vmax.f32 %v615_v28, %v616_v29 }
 0xbac   : > { %v618_v31 = vrot.slane %v617_v30, 1 }
 0xbae   : > { %v619_v32 = vmax.f32 %v617_v30, %v618_v31 }
 0xbb0   : > { %v620_v14 = vsub.f32 %v612_v26, %v619_v32 }
 0xbb2   : > { %v621_v33 = vmul.f32 1.442695, %v620_v14 }
 0xbb4   : > { %816 = vpow2.f32 %v621_v33 }
 0xbba   : > { %v817_v34 = vpop.eup %816 }
 0xbbb   : > { %v623_v35 = vrot.slane %v817_v34, 4 }
 0xbbd   : > { %v624_v36 = vadd.f32 %v817_v34, %v623_v35 }
 0xbbf   : > { %v625_v37 = vrot.slane %v624_v36, 2 }
 0xbc1   : > { %v626_v38 = vadd.f32 %v625_v37, %v624_v36 }
 0xbc3   : > { %v627_v39 = vrot.slane %v626_v38, 1 }
 0xbc5   : > { %v628_v40 = vadd.f32 %v627_v39, %v626_v38 }
 0xbc7   : > { %818 = vrcp.f32 %v628_v40  ;;  %v640_v43 = vand.u32 2147483648, %v628_v40  ;;  %v638_v45 = vand.u32 2147483647, %v628_v40  ;;  %vm634_vm6 = vweird.f32 %v628_v40 }
 0xbc9   : > { %v641_v47 = vor.u32 1.1754944e-38, %v640_v43  ;;  %vm639_vm8 = vcmp.eq.f32.partialorder %v638_v45, 8.507059e+37 }
 0xbcd   : > { %v819_v2 = vpop.eup %818 }
 0xbce   : > { %v630_v41 = vmul.f32 %v819_v2, %v628_v40  ;;  %vm635_vm5 = vweird.f32 %v819_v2 }
 0xbcf   : > { %vm636_vm7 = vmor %vm634_vm6, %vm635_vm5 }
 0xbd0   : > { %v631_v42 = vsub.f32 1.0, %v630_v41 }
 0xbd2   : > { %v632_v44 = vmul.f32 %v819_v2, %v631_v42 }
 0xbd4   : > { %v633_v46 = vadd.f32 %v819_v2, %v632_v44 }
 0xbd6   : > { %v637_v48 = vsel %vm636_vm7, %v819_v2, %v633_v46 }
 0xbd7   : > { %v642_v49 = vsel %vm639_vm8, %v641_v47, %v637_v48 }
 0xbd8   : > { %v643_v50 = vmul.f32 %v817_v34, %v642_v49 }
 0xbda   : > { %644 = vst [vmem:[#allocation4] sm:$0xff] %v643_v50 }
 0xbdb PF: > { %p747_p10 = scmp.eq.s32.totalorder %s709_s15, 3  ;;  %s655_s26 = sshll.u32 %s1110_s3, 4  ;;  %s656_s26 = int_to_ptr.hbm [resolvable:$true] %s655_s26 }
 0xbdc   : > { %s899_s27 = smov [#allocation4]  }
 0xbdd   : > { %s653_s28 = sshll.u32 %s899_s27, 4  ;;  %s654_s28 = int_to_ptr.vmem [resolvable:$true] %s653_s28 }
 0xbde   : > { %744 = dma.vmem_to_hbm [thread:$0]  (%p747_p10), %s654_s28, 128, %s656_s26, [#allocation5]  }
 0xbdf   : > { %861 = dma.done.wait (%p747_p10), [#allocation5], 128  }
 0xbe0   : > { %863 = vsyncadd (%p747_p10), [#allocation5], 4294967168 }
 0xbe1 PF: > { %s14_s14 = sadd.s32 1, %s874_s14   ;;  %s1111_s12 = smov %s870_s13 }
 0xbe2   : > { %p11_p11 = scmp.ge.s32.totalorder %s14_s14, 6   ;;  %s1112_s13 = smov %s1114_s16 }
 0xbe4   :  { %13 = sbr.rel (!%p11_p11) target bundleno = 2 (0x2), region = 108 }
 0xbe9   :  { %669 = vsyncpa [#allocation5], 1 }
 0xbea   :  { %671 = vsyncpa [#allocation5 + $0x1], 1 }

</bundles_post_ra>
